<compile_context>
chip_gen: v7x
topology: tpu7x:2x2x1
jax: 0.10.0
libtpu: 0.0.40
codegen_flags: <defaults>
</compile_context>

<pallas_src>
import functools
import math

import jax
import jax.numpy as jnp
from jax.experimental import pallas as pl
from jax.experimental.pallas import tpu as pltpu

_LANE = 128
_SUBLANE = 8


def _round_up(x, m):
    return (x + m - 1) // m * m


def _dice_sums_kernel(yt_ref, yp_ref, top_ref, bot_ref, *, n_chunks):
    """Accumulate per-(n,c) lane-partial sums of y_true*y_pred and y_true+y_pred."""
    j = pl.program_id(1)

    # Outputs are resident across the (sequential) reduction axis j: zero once.
    @pl.when(j == 0)
    def _():
        top_ref[...] = jnp.zeros_like(top_ref)
        bot_ref[...] = jnp.zeros_like(bot_ref)

    tile_bc = yt_ref.shape[0]
    acc_top = jnp.zeros((tile_bc, _LANE), jnp.float32)
    acc_bot = jnp.zeros((tile_bc, _LANE), jnp.float32)

    # Lane-aligned 128-wide chunks: vreg-granular slices, no relayout, and the
    # cross-lane reduction is deferred to plain JAX outside the kernel.
    for k in range(n_chunks):
        lo = k * _LANE
        yt = yt_ref[:, lo:lo + _LANE].astype(jnp.float32)
        yp = yp_ref[:, lo:lo + _LANE].astype(jnp.float32)
        acc_top = acc_top + yt * yp
        acc_bot = acc_bot + (yt + yp)

    top_ref[...] += acc_top
    bot_ref[...] += acc_bot


def dice_avg(y_pred, y_true, bg, *, tile_bc_max=64, tile_s_max=2048):
    """Pallas TPU version of Dice_avg.forward. Returns (mean(dice), dice)."""
    # Channel slice, as in the PyTorch module.
    y_true = y_true[:, bg:]
    y_pred = y_pred[:, bg:]
    n, c = y_pred.shape[0], y_pred.shape[1]
    spatial = y_pred.shape[2:]
    s = int(math.prod(spatial)) if spatial else 1
    bc = n * c

    yp = y_pred.reshape(bc, s)
    yt = y_true.reshape(bc, s)

    # Tile sizes: sublane-aligned BC tiles, lane-dense S tiles, capped so
    # 2 inputs x 2 buffers stay small enough for every chip's scoped VMEM.
    tile_bc = min(tile_bc_max, _round_up(bc, _SUBLANE))
    tile_s = min(tile_s_max, _round_up(s, _LANE))
    bc_pad = _round_up(bc, tile_bc)
    s_pad = _round_up(s, tile_s)

    if (bc_pad, s_pad) != (bc, s):
        yp = jnp.pad(yp, ((0, bc_pad - bc), (0, s_pad - s)))
        yt = jnp.pad(yt, ((0, bc_pad - bc), (0, s_pad - s)))

    grid = (bc_pad // tile_bc, s_pad // tile_s)
    n_chunks = tile_s // _LANE
    kernel = functools.partial(_dice_sums_kernel, n_chunks=n_chunks)

    itemsize = jnp.dtype(yp.dtype).itemsize
    cost = pl.CostEstimate(
        flops=4 * bc_pad * s_pad,
        transcendentals=0,
        bytes_accessed=2 * bc_pad * s_pad * itemsize + 2 * bc_pad * _LANE * 4,
    )

    top_p, bot_p = pl.pallas_call(
        kernel,
        out_shape=(
            jax.ShapeDtypeStruct((bc_pad, _LANE), jnp.float32),
            jax.ShapeDtypeStruct((bc_pad, _LANE), jnp.float32),
        ),
        grid_spec=pltpu.PrefetchScalarGridSpec(
            num_scalar_prefetch=0,
            grid=grid,
            in_specs=[
                pl.BlockSpec((tile_bc, tile_s), lambda i, j: (i, j)),
                pl.BlockSpec((tile_bc, tile_s), lambda i, j: (i, j)),
            ],
            out_specs=(
                pl.BlockSpec((tile_bc, _LANE), lambda i, j: (i, 0)),
                pl.BlockSpec((tile_bc, _LANE), lambda i, j: (i, 0)),
            ),
        ),
        compiler_params=pltpu.CompilerParams(
            dimension_semantics=("parallel", "arbitrary"),
        ),
        cost_estimate=cost,
    )(yt, yp)

    # Cheap finishing math in plain JAX (tiny (BC, 128) arrays).
    top_sum = jnp.sum(top_p, axis=-1)[:bc]
    bot_sum = jnp.sum(bot_p, axis=-1)[:bc]

    top = 2.0 * top_sum
    bottom = jnp.maximum(bot_sum, jnp.float32(1e-5))  # torch.clamp(min=1e-5)
    dice = 1.0 - top / bottom
    dice = dice.reshape(n, c)
    return jnp.mean(dice), dice


def _dice_avg_ref(y_pred, y_true, bg):
    """Pure-JAX reference mirroring the PyTorch module."""
    ndims = y_pred.ndim - 2
    axes = tuple(range(2, ndims + 2))
    yt = y_true[:, bg:]
    yp = y_pred[:, bg:]
    top = 2.0 * jnp.sum(yt * yp, axis=axes)
    bottom = jnp.maximum(jnp.sum(yt + yp, axis=axes), 1e-5)
    dice = 1.0 - top / bottom
    return jnp.mean(dice), dice


if __name__ == "__main__":
    key = jax.random.PRNGKey(0)
    k1, k2 = jax.random.split(key)
    # 5-D segmentation tensors (N, C, D, H, W), as the module's forward implies.
    shape = (2, 4, 8, 16, 16)
    y_pred = jax.random.uniform(k1, shape, dtype=jnp.float32)
    y_true = jax.random.uniform(k2, shape, dtype=jnp.float32)
    bg = 1

    mean_d, dice = dice_avg(y_pred, y_true, bg)
    mean_d = jax.block_until_ready(mean_d)
    dice = jax.block_until_ready(dice)

    ref_mean, ref_dice = _dice_avg_ref(y_pred, y_true, bg)

    assert jnp.allclose(mean_d, ref_mean, rtol=1e-5, atol=1e-5), (mean_d, ref_mean)
    assert jnp.allclose(dice, ref_dice, rtol=1e-5, atol=1e-5), (dice, ref_dice)

    print("KERNEL_OK")
</pallas_src>

<mosaic_0001>
module attributes {stable_mosaic.version = 11 : i64} {
  func.func @_dice_sums_kernel(%arg0: i32, %arg1: i32, %arg2: memref<8x2048xf32, #tpu.memory_space<vmem>>, %arg3: memref<8x2048xf32, #tpu.memory_space<vmem>>, %arg4: memref<8x128xf32, #tpu.memory_space<vmem>>, %arg5: memref<8x128xf32, #tpu.memory_space<vmem>>) attributes {dimension_semantics = [#tpu.dimension_semantics<parallel>, #tpu.dimension_semantics<arbitrary>], iteration_bounds = array<i64: 1, 1>, scalar_prefetch = 0 : i64, scratch_operands = 0 : i64, tpu.core_type = #tpu.core_type<tc>, window_params = [{transform_indices = @transform_0, window_bounds = array<i64: 8, 2048>}, {transform_indices = @transform_1, window_bounds = array<i64: 8, 2048>}, {transform_indices = @transform_2, window_bounds = array<i64: 8, 128>}, {transform_indices = @transform_3, window_bounds = array<i64: 8, 128>}]} {
    %c0_i32 = arith.constant 0 : i32
    %0 = arith.cmpi eq, %arg1, %c0_i32 : i32
    %1 = arith.extui %0 : i1 to i32
    %c0_i32_0 = arith.constant 0 : i32
    %2 = arith.cmpi ne, %1, %c0_i32_0 : i32
    scf.if %2 {
      %cst_58 = arith.constant 0.000000e+00 : f32
      %107 = vector.broadcast %cst_58 : f32 to vector<8x128xf32>
      %c0_59 = arith.constant 0 : index
      %c0_60 = arith.constant 0 : index
      %108 = vector.load %arg4[%c0_59, %c0_60] : memref<8x128xf32, #tpu.memory_space<vmem>>, vector<8x128xf32>
      tpu.vector_store %arg4[%c0_59, %c0_60], %107 {strides = array<i32>} : memref<8x128xf32, #tpu.memory_space<vmem>>, vector<8x128xf32>,
      %cst_61 = arith.constant 0.000000e+00 : f32
      %109 = vector.broadcast %cst_61 : f32 to vector<8x128xf32>
      %c0_62 = arith.constant 0 : index
      %c0_63 = arith.constant 0 : index
      %110 = vector.load %arg5[%c0_62, %c0_63] : memref<8x128xf32, #tpu.memory_space<vmem>>, vector<8x128xf32>
      tpu.vector_store %arg5[%c0_62, %c0_63], %109 {strides = array<i32>} : memref<8x128xf32, #tpu.memory_space<vmem>>, vector<8x128xf32>,
    } else {
    }
    %cst = arith.constant 0.000000e+00 : f32
    %3 = vector.broadcast %cst : f32 to vector<8x128xf32>
    %cst_1 = arith.constant 0.000000e+00 : f32
    %4 = vector.broadcast %cst_1 : f32 to vector<8x128xf32>
    %c0 = arith.constant 0 : index
    %c0_2 = arith.constant 0 : index
    %5 = vector.load %arg2[%c0, %c0_2] : memref<8x2048xf32, #tpu.memory_space<vmem>>, vector<8x128xf32>
    %c0_3 = arith.constant 0 : index
    %c0_4 = arith.constant 0 : index
    %6 = vector.load %arg3[%c0_3, %c0_4] : memref<8x2048xf32, #tpu.memory_space<vmem>>, vector<8x128xf32>
    %7 = arith.mulf %5, %6 : vector<8x128xf32>
    %8 = arith.addf %3, %7 : vector<8x128xf32>
    %9 = arith.addf %5, %6 : vector<8x128xf32>
    %10 = arith.addf %4, %9 : vector<8x128xf32>
    %c0_5 = arith.constant 0 : index
    %c128 = arith.constant 128 : index
    %11 = vector.load %arg2[%c0_5, %c128] : memref<8x2048xf32, #tpu.memory_space<vmem>>, vector<8x128xf32>
    %c0_6 = arith.constant 0 : index
    %c128_7 = arith.constant 128 : index
    %12 = vector.load %arg3[%c0_6, %c128_7] : memref<8x2048xf32, #tpu.memory_space<vmem>>, vector<8x128xf32>
    %13 = arith.mulf %11, %12 : vector<8x128xf32>
    %14 = arith.addf %8, %13 : vector<8x128xf32>
    %15 = arith.addf %11, %12 : vector<8x128xf32>
    %16 = arith.addf %10, %15 : vector<8x128xf32>
    %c0_8 = arith.constant 0 : index
    %c256 = arith.constant 256 : index
    %17 = vector.load %arg2[%c0_8, %c256] : memref<8x2048xf32, #tpu.memory_space<vmem>>, vector<8x128xf32>
    %c0_9 = arith.constant 0 : index
    %c256_10 = arith.constant 256 : index
    %18 = vector.load %arg3[%c0_9, %c256_10] : memref<8x2048xf32, #tpu.memory_space<vmem>>, vector<8x128xf32>
    %19 = arith.mulf %17, %18 : vector<8x128xf32>
    %20 = arith.addf %14, %19 : vector<8x128xf32>
    %21 = arith.addf %17, %18 : vector<8x128xf32>
    %22 = arith.addf %16, %21 : vector<8x128xf32>
    %c0_11 = arith.constant 0 : index
    %c384 = arith.constant 384 : index
    %23 = vector.load %arg2[%c0_11, %c384] : memref<8x2048xf32, #tpu.memory_space<vmem>>, vector<8x128xf32>
    %c0_12 = arith.constant 0 : index
    %c384_13 = arith.constant 384 : index
    %24 = vector.load %arg3[%c0_12, %c384_13] : memref<8x2048xf32, #tpu.memory_space<vmem>>, vector<8x128xf32>
    %25 = arith.mulf %23, %24 : vector<8x128xf32>
    %26 = arith.addf %20, %25 : vector<8x128xf32>
    %27 = arith.addf %23, %24 : vector<8x128xf32>
    %28 = arith.addf %22, %27 : vector<8x128xf32>
    %c0_14 = arith.constant 0 : index
    %c512 = arith.constant 512 : index
    %29 = vector.load %arg2[%c0_14, %c512] : memref<8x2048xf32, #tpu.memory_space<vmem>>, vector<8x128xf32>
    %c0_15 = arith.constant 0 : index
    %c512_16 = arith.constant 512 : index
    %30 = vector.load %arg3[%c0_15, %c512_16] : memref<8x2048xf32, #tpu.memory_space<vmem>>, vector<8x128xf32>
    %31 = arith.mulf %29, %30 : vector<8x128xf32>
    %32 = arith.addf %26, %31 : vector<8x128xf32>
    %33 = arith.addf %29, %30 : vector<8x128xf32>
    %34 = arith.addf %28, %33 : vector<8x128xf32>
    %c0_17 = arith.constant 0 : index
    %c640 = arith.constant 640 : index
    %35 = vector.load %arg2[%c0_17, %c640] : memref<8x2048xf32, #tpu.memory_space<vmem>>, vector<8x128xf32>
    %c0_18 = arith.constant 0 : index
    %c640_19 = arith.constant 640 : index
    %36 = vector.load %arg3[%c0_18, %c640_19] : memref<8x2048xf32, #tpu.memory_space<vmem>>, vector<8x128xf32>
    %37 = arith.mulf %35, %36 : vector<8x128xf32>
    %38 = arith.addf %32, %37 : vector<8x128xf32>
    %39 = arith.addf %35, %36 : vector<8x128xf32>
    %40 = arith.addf %34, %39 : vector<8x128xf32>
    %c0_20 = arith.constant 0 : index
    %c768 = arith.constant 768 : index
    %41 = vector.load %arg2[%c0_20, %c768] : memref<8x2048xf32, #tpu.memory_space<vmem>>, vector<8x128xf32>
    %c0_21 = arith.constant 0 : index
    %c768_22 = arith.constant 768 : index
    %42 = vector.load %arg3[%c0_21, %c768_22] : memref<8x2048xf32, #tpu.memory_space<vmem>>, vector<8x128xf32>
    %43 = arith.mulf %41, %42 : vector<8x128xf32>
    %44 = arith.addf %38, %43 : vector<8x128xf32>
    %45 = arith.addf %41, %42 : vector<8x128xf32>
    %46 = arith.addf %40, %45 : vector<8x128xf32>
    %c0_23 = arith.constant 0 : index
    %c896 = arith.constant 896 : index
    %47 = vector.load %arg2[%c0_23, %c896] : memref<8x2048xf32, #tpu.memory_space<vmem>>, vector<8x128xf32>
    %c0_24 = arith.constant 0 : index
    %c896_25 = arith.constant 896 : index
    %48 = vector.load %arg3[%c0_24, %c896_25] : memref<8x2048xf32, #tpu.memory_space<vmem>>, vector<8x128xf32>
    %49 = arith.mulf %47, %48 : vector<8x128xf32>
    %50 = arith.addf %44, %49 : vector<8x128xf32>
    %51 = arith.addf %47, %48 : vector<8x128xf32>
    %52 = arith.addf %46, %51 : vector<8x128xf32>
    %c0_26 = arith.constant 0 : index
    %c1024 = arith.constant 1024 : index
    %53 = vector.load %arg2[%c0_26, %c1024] : memref<8x2048xf32, #tpu.memory_space<vmem>>, vector<8x128xf32>
    %c0_27 = arith.constant 0 : index
    %c1024_28 = arith.constant 1024 : index
    %54 = vector.load %arg3[%c0_27, %c1024_28] : memref<8x2048xf32, #tpu.memory_space<vmem>>, vector<8x128xf32>
    %55 = arith.mulf %53, %54 : vector<8x128xf32>
    %56 = arith.addf %50, %55 : vector<8x128xf32>
    %57 = arith.addf %53, %54 : vector<8x128xf32>
    %58 = arith.addf %52, %57 : vector<8x128xf32>
    %c0_29 = arith.constant 0 : index
    %c1152 = arith.constant 1152 : index
    %59 = vector.load %arg2[%c0_29, %c1152] : memref<8x2048xf32, #tpu.memory_space<vmem>>, vector<8x128xf32>
    %c0_30 = arith.constant 0 : index
    %c1152_31 = arith.constant 1152 : index
    %60 = vector.load %arg3[%c0_30, %c1152_31] : memref<8x2048xf32, #tpu.memory_space<vmem>>, vector<8x128xf32>
    %61 = arith.mulf %59, %60 : vector<8x128xf32>
    %62 = arith.addf %56, %61 : vector<8x128xf32>
    %63 = arith.addf %59, %60 : vector<8x128xf32>
    %64 = arith.addf %58, %63 : vector<8x128xf32>
    %c0_32 = arith.constant 0 : index
    %c1280 = arith.constant 1280 : index
    %65 = vector.load %arg2[%c0_32, %c1280] : memref<8x2048xf32, #tpu.memory_space<vmem>>, vector<8x128xf32>
    %c0_33 = arith.constant 0 : index
    %c1280_34 = arith.constant 1280 : index
    %66 = vector.load %arg3[%c0_33, %c1280_34] : memref<8x2048xf32, #tpu.memory_space<vmem>>, vector<8x128xf32>
    %67 = arith.mulf %65, %66 : vector<8x128xf32>
    %68 = arith.addf %62, %67 : vector<8x128xf32>
    %69 = arith.addf %65, %66 : vector<8x128xf32>
    %70 = arith.addf %64, %69 : vector<8x128xf32>
    %c0_35 = arith.constant 0 : index
    %c1408 = arith.constant 1408 : index
    %71 = vector.load %arg2[%c0_35, %c1408] : memref<8x2048xf32, #tpu.memory_space<vmem>>, vector<8x128xf32>
    %c0_36 = arith.constant 0 : index
    %c1408_37 = arith.constant 1408 : index
    %72 = vector.load %arg3[%c0_36, %c1408_37] : memref<8x2048xf32, #tpu.memory_space<vmem>>, vector<8x128xf32>
    %73 = arith.mulf %71, %72 : vector<8x128xf32>
    %74 = arith.addf %68, %73 : vector<8x128xf32>
    %75 = arith.addf %71, %72 : vector<8x128xf32>
    %76 = arith.addf %70, %75 : vector<8x128xf32>
    %c0_38 = arith.constant 0 : index
    %c1536 = arith.constant 1536 : index
    %77 = vector.load %arg2[%c0_38, %c1536] : memref<8x2048xf32, #tpu.memory_space<vmem>>, vector<8x128xf32>
    %c0_39 = arith.constant 0 : index
    %c1536_40 = arith.constant 1536 : index
    %78 = vector.load %arg3[%c0_39, %c1536_40] : memref<8x2048xf32, #tpu.memory_space<vmem>>, vector<8x128xf32>
    %79 = arith.mulf %77, %78 : vector<8x128xf32>
    %80 = arith.addf %74, %79 : vector<8x128xf32>
    %81 = arith.addf %77, %78 : vector<8x128xf32>
    %82 = arith.addf %76, %81 : vector<8x128xf32>
    %c0_41 = arith.constant 0 : index
    %c1664 = arith.constant 1664 : index
    %83 = vector.load %arg2[%c0_41, %c1664] : memref<8x2048xf32, #tpu.memory_space<vmem>>, vector<8x128xf32>
    %c0_42 = arith.constant 0 : index
    %c1664_43 = arith.constant 1664 : index
    %84 = vector.load %arg3[%c0_42, %c1664_43] : memref<8x2048xf32, #tpu.memory_space<vmem>>, vector<8x128xf32>
    %85 = arith.mulf %83, %84 : vector<8x128xf32>
    %86 = arith.addf %80, %85 : vector<8x128xf32>
    %87 = arith.addf %83, %84 : vector<8x128xf32>
    %88 = arith.addf %82, %87 : vector<8x128xf32>
    %c0_44 = arith.constant 0 : index
    %c1792 = arith.constant 1792 : index
    %89 = vector.load %arg2[%c0_44, %c1792] : memref<8x2048xf32, #tpu.memory_space<vmem>>, vector<8x128xf32>
    %c0_45 = arith.constant 0 : index
    %c1792_46 = arith.constant 1792 : index
    %90 = vector.load %arg3[%c0_45, %c1792_46] : memref<8x2048xf32, #tpu.memory_space<vmem>>, vector<8x128xf32>
    %91 = arith.mulf %89, %90 : vector<8x128xf32>
    %92 = arith.addf %86, %91 : vector<8x128xf32>
    %93 = arith.addf %89, %90 : vector<8x128xf32>
    %94 = arith.addf %88, %93 : vector<8x128xf32>
    %c0_47 = arith.constant 0 : index
    %c1920 = arith.constant 1920 : index
    %95 = vector.load %arg2[%c0_47, %c1920] : memref<8x2048xf32, #tpu.memory_space<vmem>>, vector<8x128xf32>
    %c0_48 = arith.constant 0 : index
    %c1920_49 = arith.constant 1920 : index
    %96 = vector.load %arg3[%c0_48, %c1920_49] : memref<8x2048xf32, #tpu.memory_space<vmem>>, vector<8x128xf32>
    %97 = arith.mulf %95, %96 : vector<8x128xf32>
    %98 = arith.addf %92, %97 : vector<8x128xf32>
    %99 = arith.addf %95, %96 : vector<8x128xf32>
    %100 = arith.addf %94, %99 : vector<8x128xf32>
    %c0_50 = arith.constant 0 : index
    %c0_51 = arith.constant 0 : index
    %101 = vector.load %arg4[%c0_50, %c0_51] : memref<8x128xf32, #tpu.memory_space<vmem>>, vector<8x128xf32>
    %102 = arith.addf %101, %98 : vector<8x128xf32>
    %c0_52 = arith.constant 0 : index
    %c0_53 = arith.constant 0 : index
    %103 = vector.load %arg4[%c0_52, %c0_53] : memref<8x128xf32, #tpu.memory_space<vmem>>, vector<8x128xf32>
    tpu.vector_store %arg4[%c0_52, %c0_53], %102 {strides = array<i32>} : memref<8x128xf32, #tpu.memory_space<vmem>>, vector<8x128xf32>,
    %c0_54 = arith.constant 0 : index
    %c0_55 = arith.constant 0 : index
    %104 = vector.load %arg5[%c0_54, %c0_55] : memref<8x128xf32, #tpu.memory_space<vmem>>, vector<8x128xf32>
    %105 = arith.addf %104, %100 : vector<8x128xf32>
    %c0_56 = arith.constant 0 : index
    %c0_57 = arith.constant 0 : index
    %106 = vector.load %arg5[%c0_56, %c0_57] : memref<8x128xf32, #tpu.memory_space<vmem>>, vector<8x128xf32>
    tpu.vector_store %arg5[%c0_56, %c0_57], %105 {strides = array<i32>} : memref<8x128xf32, #tpu.memory_space<vmem>>, vector<8x128xf32>,
    return
  }
  func.func @transform_0(%arg0: i32, %arg1: i32) -> (i32, i32) {
    %c0_i32 = arith.constant 0 : i32
    return %arg0, %arg1 : i32, i32
  }
  func.func @transform_1(%arg0: i32, %arg1: i32) -> (i32, i32) {
    %c0_i32 = arith.constant 0 : i32
    return %arg0, %arg1 : i32, i32
  }
  func.func @transform_2(%arg0: i32, %arg1: i32) -> (i32, i32) {
    %c0_i32 = arith.constant 0 : i32
    %c0_i32_0 = arith.constant 0 : i32
    return %arg0, %c0_i32 : i32, i32
  }
  func.func @transform_3(%arg0: i32, %arg1: i32) -> (i32, i32) {
    %c0_i32 = arith.constant 0 : i32
    %c0_i32_0 = arith.constant 0 : i32
    return %arg0, %c0_i32 : i32, i32
  }
}

</mosaic_0001>

<bundles_post_ra>
// kernel: tpu_custom_call.1
= control target key start
LH: loop header
LB: loop body
LE: loop exit
PB: predicated region body
PF: predicated region fallthrough
CT: control target
= control target key end

     0   :  { %9 = vsyncpa [#allocation3], 0  ;;  %s350_s0 = inlined_call_operand.hbm [shape: f32[8,2048], index: 0, kind: input, shape index: {}]   ;;  %s351_s1 = inlined_call_operand.hbm [shape: f32[8,2048], index: 1, kind: input, shape index: {}]   ;;  %s352_s2 = inlined_call_operand.hbm [shape: f32[8,128], index: 2, kind: output, shape index: {0}]   ;;  %s353_s3 = inlined_call_operand.hbm [shape: f32[8,128], index: 3, kind: output, shape index: {1}]  }
   0x1   :  { %10 = vsyncpa [#allocation6], 0 }
   0x2   :  { %11 = vsyncpa [#allocation4], 0 }
   0x3   :  { %12 = vsyncpa [#allocation9], 0  ;;  %s278_s12 = smov [#allocation2]   ;;  %s279_s14 = smov [#allocation5]  }
   0x4   :  { %s19_s13 = sshll.u32 %s278_s12, 4  ;;  %s29_s15 = sshll.u32 %s279_s14, 4  ;;  %s20_s13 = int_to_ptr.vmem [resolvable:$true] %s19_s13  ;;  %s30_s15 = int_to_ptr.vmem [resolvable:$true] %s29_s15 }
   0x5   :  { %s182_s18 = scalar_lea.hbm %s350_s0, 2048 }
   0x6   :  { %p183_p0 = scmp.ne.s32.totalorder %s350_s0, %s182_s18  ;;  %p186_p1 = scmp.lt.u32.totalorder %s182_s18, %s350_s0 }
   0x8   :  { %p188_p2 = pnand %p186_p1, %p183_p0 }
   0xa   :  { %191 = shalt.err (!%p188_p2)
}
   0xb   :  { %s192_s23 = scalar_lea.vmem %s20_s13, 2048  ;;  %p197_p4 = scmp.lt.s32.totalorder %s20_s13, %s20_s13 }
   0xc   :  { %p193_p3 = scmp.ne.s32.totalorder %s20_s13, %s192_s23  ;;  %p198_p5 = scmp.lt.s32.totalorder %s192_s23, %s192_s23 }
   0xe   :  { %p199_p6 = por %p198_p5, %p197_p4 }
  0x10   :  { %p200_p7 = pnand %p199_p6, %p193_p3 }
  0x12   :  { %203 = shalt.err (!%p200_p7)
}
  0x13   :  { %22 = dma.hbm_to_vmem [thread:$0]  %s350_s0, 2048, %s20_s13, [#allocation3]  }
  0x14   :  { %s204_s28 = scalar_lea.hbm %s351_s1, 2048 }
  0x15   :  { %p205_p8 = scmp.ne.s32.totalorder %s351_s1, %s204_s28  ;;  %p208_p9 = scmp.lt.u32.totalorder %s204_s28, %s351_s1 }
  0x17   :  { %p210_p10 = pnand %p208_p9, %p205_p8 }
  0x19   :  { %213 = shalt.err (!%p210_p10)
}
  0x1a   :  { %s214_s6 = scalar_lea.vmem %s30_s15, 2048  ;;  %p219_p12 = scmp.lt.s32.totalorder %s30_s15, %s30_s15 }
  0x1b   :  { %p215_p11 = scmp.ne.s32.totalorder %s30_s15, %s214_s6  ;;  %p220_p13 = scmp.lt.s32.totalorder %s214_s6, %s214_s6 }
  0x1d   :  { %p221_p0 = por %p220_p13, %p219_p12 }
  0x1f   :  { %p222_p1 = pnand %p221_p0, %p215_p11 }
  0x21   :  { %225 = shalt.err (!%p222_p1)
}
  0x22   :  { %32 = dma.hbm_to_vmem [thread:$0]  %s351_s1, 2048, %s30_s15, [#allocation6]  }
  0x23   :  { %270 = dma.done.wait [#allocation3], 2048  }
  0x24   :  { %271 = vsyncadd [#allocation3], 4294965248 }
  0x25   :  { %272 = dma.done.wait [#allocation6], 2048  }
  0x26   :  { %273 = vsyncadd [#allocation6], 4294965248  ;;  %v45_v0 = vld [vmem:[#allocation2] sm:$0xff]  ;;  %v51_v2 = vld [vmem:[#allocation2 + $0x8] sm:$0xff]  ;;  %s280_s1 = smov [#allocation7]   ;;  %s281_s9 = smov [#allocation8]  }
  0x27   :  { %v46_v1 = vld [vmem:[#allocation5] sm:$0xff]  ;;  %v52_v4 = vld [vmem:[#allocation5 + $0x8] sm:$0xff]  ;;  %v57_v5 = vld [vmem:[#allocation2 + $0x10] sm:$0xff]  ;;  %s153_s8 = sshll.u32 %s280_s1, 4  ;;  %s163_s10 = sshll.u32 %s281_s9, 4  ;;  %s154_s8 = int_to_ptr.vmem [resolvable:$true] %s153_s8  ;;  %s164_s10 = int_to_ptr.vmem [resolvable:$true] %s163_s10 }
  0x28   :  { %v47_v3 = vmul.f32 %v46_v1, %v45_v0  ;;  %v58_v6 = vld [vmem:[#allocation5 + $0x10] sm:$0xff]  ;;  %v49_v7 = vadd.f32 %v46_v1, %v45_v0  ;;  %v53_v8 = vmul.f32 %v52_v4, %v51_v2  ;;  %v63_v10 = vld [vmem:[#allocation2 + $0x18] sm:$0xff]  ;;  %v55_v12 = vadd.f32 %v52_v4, %v51_v2  ;;  %v69_v14 = vld [vmem:[#allocation2 + $0x20] sm:$0xff]  ;;  %s226_s11 = scalar_lea.vmem %s154_s8, 128  ;;  %p231_p3 = scmp.lt.s32.totalorder %s154_s8, %s154_s8 }
  0x29   :  { %v59_v9 = vmul.f32 %v58_v6, %v57_v5  ;;  %v64_v11 = vld [vmem:[#allocation5 + $0x18] sm:$0xff]  ;;  %v61_v13 = vadd.f32 %v58_v6, %v57_v5  ;;  %v70_v15 = vld [vmem:[#allocation5 + $0x20] sm:$0xff]  ;;  %v75_v20 = vld [vmem:[#allocation2 + $0x28] sm:$0xff]  ;;  %p227_p2 = scmp.ne.s32.totalorder %s154_s8, %s226_s11  ;;  %p232_p4 = scmp.lt.s32.totalorder %s226_s11, %s226_s11 }
  0x2a   :  { %v54_v16 = vadd.f32 %v53_v8, %v47_v3  ;;  %v65_v17 = vmul.f32 %v64_v11, %v63_v10  ;;  %v56_v18 = vadd.f32 %v55_v12, %v49_v7  ;;  %v67_v19 = vadd.f32 %v64_v11, %v63_v10  ;;  %v76_v21 = vld [vmem:[#allocation5 + $0x28] sm:$0xff]  ;;  %v81_v26 = vld [vmem:[#allocation2 + $0x30] sm:$0xff]  ;;  %v87_v32 = vld [vmem:[#allocation2 + $0x38] sm:$0xff] }
  0x2b   :  { %v71_v23 = vmul.f32 %v70_v15, %v69_v14  ;;  %v73_v25 = vadd.f32 %v70_v15, %v69_v14  ;;  %v82_v27 = vld [vmem:[#allocation5 + $0x30] sm:$0xff]  ;;  %v77_v29 = vmul.f32 %v76_v21, %v75_v20  ;;  %v79_v31 = vadd.f32 %v76_v21, %v75_v20  ;;  %v88_v33 = vld [vmem:[#allocation5 + $0x38] sm:$0xff]  ;;  %v93_v38 = vld [vmem:[#allocation2 + $0x40] sm:$0xff]  ;;  %p233_p5 = por %p232_p4, %p231_p3 }
  0x2c   :  { %v60_v22 = vadd.f32 %v59_v9, %v54_v16  ;;  %v62_v24 = vadd.f32 %v61_v13, %v56_v18  ;;  %v83_v35 = vmul.f32 %v82_v27, %v81_v26  ;;  %v85_v37 = vadd.f32 %v82_v27, %v81_v26  ;;  %v94_v39 = vld [vmem:[#allocation5 + $0x40] sm:$0xff]  ;;  %v99_v44 = vld [vmem:[#allocation2 + $0x48] sm:$0xff]  ;;  %v105_v50 = vld [vmem:[#allocation2 + $0x50] sm:$0xff] }
  0x2d   :  { %v89_v41 = vmul.f32 %v88_v33, %v87_v32  ;;  %v91_v43 = vadd.f32 %v88_v33, %v87_v32  ;;  %v100_v45 = vld [vmem:[#allocation5 + $0x48] sm:$0xff]  ;;  %v95_v47 = vmul.f32 %v94_v39, %v93_v38  ;;  %v97_v49 = vadd.f32 %v94_v39, %v93_v38  ;;  %v106_v51 = vld [vmem:[#allocation5 + $0x50] sm:$0xff]  ;;  %v111_v56 = vld [vmem:[#allocation2 + $0x58] sm:$0xff]  ;;  %p234_p6 = pnand %p233_p5, %p227_p2 }
  0x2e   :  { %v66_v28 = vadd.f32 %v65_v17, %v60_v22  ;;  %v68_v30 = vadd.f32 %v67_v19, %v62_v24  ;;  %v101_v53 = vmul.f32 %v100_v45, %v99_v44  ;;  %v103_v55 = vadd.f32 %v100_v45, %v99_v44  ;;  %v112_v57 = vld [vmem:[#allocation5 + $0x58] sm:$0xff]  ;;  %v117_v62 = vld [vmem:[#allocation2 + $0x60] sm:$0xff]  ;;  %v123_v4 = vld [vmem:[#allocation2 + $0x68] sm:$0xff] }
  0x2f   :  { %v107_v59 = vmul.f32 %v106_v51, %v105_v50  ;;  %v109_v61 = vadd.f32 %v106_v51, %v105_v50  ;;  %v118_v63 = vld [vmem:[#allocation5 + $0x60] sm:$0xff]  ;;  %v113_v1 = vmul.f32 %v112_v57, %v111_v56  ;;  %v115_v3 = vadd.f32 %v112_v57, %v111_v56  ;;  %v124_v5 = vld [vmem:[#allocation5 + $0x68] sm:$0xff]  ;;  %v129_v10 = vld [vmem:[#allocation2 + $0x70] sm:$0xff] }
  0x30   :  { %v72_v34 = vadd.f32 %v71_v23, %v66_v28  ;;  %v74_v36 = vadd.f32 %v73_v25, %v68_v30  ;;  %v119_v7 = vmul.f32 %v118_v63, %v117_v62  ;;  %v121_v9 = vadd.f32 %v118_v63, %v117_v62  ;;  %v130_v11 = vld [vmem:[#allocation5 + $0x70] sm:$0xff]  ;;  %v135_v16 = vld [vmem:[#allocation2 + $0x78] sm:$0xff] }
  0x31   :  { %v125_v13 = vmul.f32 %v124_v5, %v123_v4  ;;  %v127_v15 = vadd.f32 %v124_v5, %v123_v4  ;;  %v136_v17 = vld [vmem:[#allocation5 + $0x78] sm:$0xff]  ;;  %v131_v19 = vmul.f32 %v130_v11, %v129_v10  ;;  %v133_v21 = vadd.f32 %v130_v11, %v129_v10 }
  0x32   :  { %v78_v40 = vadd.f32 %v77_v29, %v72_v34  ;;  %v80_v42 = vadd.f32 %v79_v31, %v74_v36  ;;  %v137_v23 = vmul.f32 %v136_v17, %v135_v16  ;;  %v139_v25 = vadd.f32 %v136_v17, %v135_v16 }
  0x34   :  { %v84_v46 = vadd.f32 %v83_v35, %v78_v40  ;;  %v86_v48 = vadd.f32 %v85_v37, %v80_v42 }
  0x36   :  { %v90_v52 = vadd.f32 %v89_v41, %v84_v46  ;;  %v92_v54 = vadd.f32 %v91_v43, %v86_v48 }
  0x38   :  { %v96_v58 = vadd.f32 %v95_v47, %v90_v52  ;;  %v98_v60 = vadd.f32 %v97_v49, %v92_v54 }
  0x3a   :  { %v102_v0 = vadd.f32 %v101_v53, %v96_v58  ;;  %v104_v2 = vadd.f32 %v103_v55, %v98_v60 }
  0x3c   :  { %v108_v6 = vadd.f32 %v107_v59, %v102_v0  ;;  %v110_v8 = vadd.f32 %v109_v61, %v104_v2 }
  0x3e   :  { %v114_v12 = vadd.f32 %v113_v1, %v108_v6  ;;  %v116_v14 = vadd.f32 %v115_v3, %v110_v8 }
  0x40   :  { %v120_v18 = vadd.f32 %v119_v7, %v114_v12  ;;  %v122_v20 = vadd.f32 %v121_v9, %v116_v14 }
  0x42   :  { %v126_v22 = vadd.f32 %v125_v13, %v120_v18  ;;  %v128_v24 = vadd.f32 %v127_v15, %v122_v20 }
  0x44   :  { %v132_v26 = vadd.f32 %v131_v19, %v126_v22  ;;  %v134_v27 = vadd.f32 %v133_v21, %v128_v24 }
  0x46   :  { %v138_v28 = vadd.f32 %v137_v23, %v132_v26  ;;  %v140_v29 = vadd.f32 %v139_v25, %v134_v27 }
  0x48   :  { %143 = vst [vmem:[#allocation7] sm:$0xff] %v138_v28  ;;  %146 = vst [vmem:[#allocation8] sm:$0xff] %v140_v29 }
  0x49   :  { %237 = shalt.err (!%p234_p6)
}
  0x4a   :  { %s238_s14 = scalar_lea.hbm %s352_s2, 128 }
  0x4b   :  { %p239_p7 = scmp.ne.s32.totalorder %s352_s2, %s238_s14  ;;  %p242_p8 = scmp.lt.u32.totalorder %s238_s14, %s352_s2 }
  0x4d   :  { %p244_p9 = pnand %p242_p8, %p239_p7 }
  0x4f   :  { %247 = shalt.err (!%p244_p9)
}
  0x50   :  { %156 = dma.vmem_to_hbm [thread:$0]  %s154_s8, 128, %s352_s2, [#allocation4]  }
  0x51   :  { %s248_s21 = scalar_lea.vmem %s164_s10, 128  ;;  %p253_p11 = scmp.lt.s32.totalorder %s164_s10, %s164_s10 }
  0x52   :  { %p249_p10 = scmp.ne.s32.totalorder %s164_s10, %s248_s21  ;;  %p254_p12 = scmp.lt.s32.totalorder %s248_s21, %s248_s21 }
  0x54   :  { %p255_p13 = por %p254_p12, %p253_p11 }
  0x56   :  { %p256_p0 = pnand %p255_p13, %p249_p10 }
  0x58   :  { %259 = shalt.err (!%p256_p0)
}
  0x59   :  { %s260_s24 = scalar_lea.hbm %s353_s3, 128 }
  0x5a   :  { %p261_p1 = scmp.ne.s32.totalorder %s353_s3, %s260_s24  ;;  %p264_p2 = scmp.lt.u32.totalorder %s260_s24, %s353_s3 }
  0x5c   :  { %p266_p3 = pnand %p264_p2, %p261_p1 }
  0x5e   :  { %269 = shalt.err (!%p266_p3)
}
  0x5f   :  { %166 = dma.vmem_to_hbm [thread:$0]  %s164_s10, 128, %s353_s3, [#allocation9]  }
  0x60   :  { %274 = dma.done.wait [#allocation4], 128  }
  0x61   :  { %275 = vsyncadd [#allocation4], 4294967168 }
  0x62   :  { %276 = dma.done.wait [#allocation9], 128  }
  0x63   :  { %277 = vsyncadd [#allocation9], 4294967168 }
  0x64   :  { %173 = vsyncpa [#allocation3], 1 }
  0x65   :  { %174 = vsyncpa [#allocation6], 1 }
  0x66   :  { %175 = vsyncpa [#allocation4], 1 }
  0x67   :  { %176 = vsyncpa [#allocation9], 1 }

</bundles_post_ra>
